<compile_context>
chip_gen: v7x
topology: tpu7x:2x2x1
jax: 0.10.0
libtpu: 0.0.40
codegen_flags: <defaults>
</compile_context>

<pallas_src>
import functools
import math

import jax
import jax.numpy as jnp
from jax.experimental import pallas as pl
from jax.experimental.pallas import tpu as pltpu


# ----------------------------------------------------------------------------
# Kernels
# ----------------------------------------------------------------------------
def _simam_kernel(x_ref, o_ref, *, hw, e_lambda, bf16_tail):
    """Ungrouped path: one (row_tile, HW) tile; each row = one (b, c) plane."""
    x = x_ref[...].astype(jnp.float32)                  # (R, HW), f32 compute

    mu = jnp.sum(x, axis=1, keepdims=True) * (1.0 / hw)  # (R, 1)
    d = x - mu
    d2 = d * d
    s = jnp.sum(d2, axis=1, keepdims=True)               # two-pass variance
    # One reciprocal per row instead of HW per-element divides.
    inv = pl.reciprocal(4.0 * (s * (1.0 / (hw - 1.0)) + e_lambda), approx=False)
    y = d2 * inv + 0.5

    if bf16_tail:
        # Transcendental + final multiply in bf16 (v6e/v7x); stats stayed f32.
        o_ref[...] = (x_ref[...] * jax.nn.sigmoid(y.astype(jnp.bfloat16))
                      ).astype(o_ref.dtype)
    else:
        o_ref[...] = (x * jax.nn.sigmoid(y)).astype(o_ref.dtype)


def _simam_grouped_kernel(x_ref, seg_ref, segt_ref, o_ref, *,
                          hw, e_lambda, bf16_tail):
    """Lane-dense path: one (row_tile, G*HW) tile; each row packs G planes.

    seg  : (G*HW, G) 0/1 f32 segment-indicator matrix (column g selects plane g)
    segT : (G, G*HW) its transpose (for broadcasting per-plane stats back).
    Per-plane reductions/broadcasts are MXU matmuls; everything else is
    elementwise on lane-dense vregs.
    """
    x = x_ref[...].astype(jnp.float32)                   # (R, G*HW)
    seg = seg_ref[...]                                   # (G*HW, G)
    segt = segt_ref[...]                                 # (G, G*HW)

    sum_x = jnp.dot(x, seg, preferred_element_type=jnp.float32)     # (R, G)
    mu = sum_x * (1.0 / hw)
    mu_b = jnp.dot(mu, segt, preferred_element_type=jnp.float32)    # (R, G*HW)

    d = x - mu_b
    d2 = d * d
    s = jnp.dot(d2, seg, preferred_element_type=jnp.float32)        # (R, G)
    inv = pl.reciprocal(4.0 * (s * (1.0 / (hw - 1.0)) + e_lambda), approx=False)
    inv_b = jnp.dot(inv, segt, preferred_element_type=jnp.float32)  # (R, G*HW)

    y = d2 * inv_b + 0.5
    if bf16_tail:
        o_ref[...] = (x_ref[...] * jax.nn.sigmoid(y.astype(jnp.bfloat16))
                      ).astype(o_ref.dtype)
    else:
        o_ref[...] = (x * jax.nn.sigmoid(y)).astype(o_ref.dtype)


# ----------------------------------------------------------------------------
# Host-side helpers
# ----------------------------------------------------------------------------
def _tpu_generation():
    """(is_v7x, is_v5e) from the device kind; conservative on failure."""
    try:
        kind = jax.devices()[0].device_kind.lower()
    except Exception:  # pragma: no cover - defensive
        kind = ""
    is_v7 = "v7" in kind
    is_v5e = ("v5 lite" in kind) or ("v5e" in kind) or ("v5litepod" in kind)
    return is_v7, is_v5e


def _choose_row_tile(rows, width, itemsize, *, target_bytes, vmem_cap_bytes,
                     min_steps):
    """Row tile (multiple of 8, or == rows) targeting ~target_bytes blocks."""
    bpr = max(1, width * itemsize)                 # native bytes per block row
    # VMEM budget per block row: double-buffered in + out, plus f32 upcast
    # temporaries (x, d, d2-ish) when the input is narrower than f32.
    bpr_budget = 4 * bpr + 3 * width * 4
    fit = max(8, ((max(bpr_budget, vmem_cap_bytes - (2 << 20)))
                  // bpr_budget) // 8 * 8)
    tile = max(8, (target_bytes // bpr) // 8 * 8)
    tile = min(tile, fit)

    # Ensure >= min_steps pipeline steps when the row count allows it so the
    # input/output DMAs have work to overlap (>=2 steps per TensorCore on v7x).
    if rows >= 8 * min_steps:
        tile = min(tile, max(8, (rows // min_steps) // 8 * 8))
    if tile >= rows:
        tile = rows          # full-dim block: always legal, no masked garbage
    return int(tile)


def simam(x, e_lambda=1e-4, row_tile=None):
    """SimAM forward. x: (B, C, H, W); returns same shape/dtype."""
    b, c, h, w = x.shape
    rows = b * c
    hw = h * w
    dtype = x.dtype
    itemsize = jnp.dtype(dtype).itemsize

    is_v7, is_v5e = _tpu_generation()
    target_bytes = (4 << 20) if is_v7 else (8 << 20)
    vmem_cap = (48 << 20) if is_v7 else (100 << 20)
    min_steps = 4 if is_v7 else 2
    bf16_tail = bool(dtype == jnp.bfloat16) and not is_v5e

    # Lane-dense grouping factor: smallest G with (G*HW) % 128 == 0.
    g = 128 // math.gcd(hw, 128)
    use_grouped = (g > 1) and (g <= 32) and (rows % g == 0)
    if use_grouped:
        n_rows, width = rows // g, g * hw
    else:
        g, n_rows, width = 1, rows, hw

    x2d = x.reshape(n_rows, width)      # contiguous reshape: no data movement

    if row_tile is None:
        row_tile = _choose_row_tile(
            n_rows, width, itemsize, target_bytes=target_bytes,
            vmem_cap_bytes=vmem_cap, min_steps=min_steps)
    row_tile = int(min(row_tile, n_rows)) if row_tile >= n_rows else int(row_tile)

    tile_bytes = row_tile * width * itemsize
    tile_f32_bytes = row_tile * width * 4
    seg_vmem = (4 * width * g * 4) if use_grouped else 0
    vmem_limit = int(min(vmem_cap,
                         max(32 << 20,
                             4 * tile_bytes + 3 * tile_f32_bytes
                             + seg_vmem + (2 << 20))))

    cost = pl.CostEstimate(
        flops=int((10 + (8 * g if use_grouped else 0)) * rows * hw),
        transcendentals=int(rows * hw),
        bytes_accessed=int(2 * rows * hw * itemsize + 2 * seg_vmem),
    )
    cparams = pltpu.CompilerParams(
        dimension_semantics=("parallel",),
        vmem_limit_bytes=vmem_limit,
    )
    grid = (pl.cdiv(n_rows, row_tile),)

    if use_grouped:
        # 0/1 segment-indicator matrices (fetched once: constant block index).
        plane_of = jnp.arange(width, dtype=jnp.int32) // hw            # (G*HW,)
        gids = jnp.arange(g, dtype=jnp.int32)                          # (G,)
        seg = (plane_of[:, None] == gids[None, :]).astype(jnp.float32)  # (G*HW, G)
        segt = (gids[:, None] == plane_of[None, :]).astype(jnp.float32)  # (G, G*HW)

        kernel = functools.partial(_simam_grouped_kernel, hw=float(hw),
                                   e_lambda=float(e_lambda),
                                   bf16_tail=bf16_tail)
        out2d = pl.pallas_call(
            kernel,
            out_shape=jax.ShapeDtypeStruct((n_rows, width), dtype),
            grid=grid,
            in_specs=[
                pl.BlockSpec((row_tile, width), lambda i: (i, 0)),
                pl.BlockSpec((width, g), lambda i: (0, 0)),
                pl.BlockSpec((g, width), lambda i: (0, 0)),
            ],
            out_specs=pl.BlockSpec((row_tile, width), lambda i: (i, 0)),
            compiler_params=cparams,
            cost_estimate=cost,
        )(x2d, seg, segt)
    else:
        kernel = functools.partial(_simam_kernel, hw=float(hw),
                                   e_lambda=float(e_lambda),
                                   bf16_tail=bf16_tail)
        out2d = pl.pallas_call(
            kernel,
            out_shape=jax.ShapeDtypeStruct((n_rows, width), dtype),
            grid=grid,
            in_specs=[pl.BlockSpec((row_tile, width), lambda i: (i, 0))],
            out_specs=pl.BlockSpec((row_tile, width), lambda i: (i, 0)),
            compiler_params=cparams,
            cost_estimate=cost,
        )(x2d)

    return out2d.reshape(b, c, h, w)


def simam_reference(x, e_lambda=1e-4):
    """Pure-JAX reference mirroring the PyTorch forward."""
    b, c, h, w = x.shape
    n = w * h - 1
    mu = jnp.mean(x, axis=(2, 3), keepdims=True)
    d = (x - mu) ** 2
    y = d / (4.0 * (jnp.sum(d, axis=(2, 3), keepdims=True) / n + e_lambda)) + 0.5
    return x * jax.nn.sigmoid(y)


# ----------------------------------------------------------------------------
# Self-test
# ----------------------------------------------------------------------------
if __name__ == "__main__":
    key = jax.random.PRNGKey(0)
    k1, k2, k3, k4 = jax.random.split(key, 4)

    # 1) Primary shape implied by the PyTorch module (NCHW), HW multiple of 128.
    x = jax.random.normal(k1, (2, 4, 16, 16), dtype=jnp.float32)
    out = jax.block_until_ready(simam(x))
    ref = simam_reference(x)
    assert out.shape == ref.shape and out.dtype == ref.dtype
    assert jnp.allclose(out, ref, atol=1e-5, rtol=1e-5), "mismatch (2,4,16,16)"

    # 2) Ragged row count (B*C = 15): single full-dim block / masked-edge path.
    x2 = jax.random.normal(k2, (3, 5, 16, 16), dtype=jnp.float32)
    out2 = jax.block_until_ready(simam(x2))
    ref2 = simam_reference(x2)
    assert jnp.allclose(out2, ref2, atol=1e-5, rtol=1e-5), "mismatch (3,5,16,16)"

    # 3) Lane-dense grouped path: HW = 28*28 = 784 (not a multiple of 128,
    #    G = 8 planes packed per block row, segmented-sum via MXU matmuls).
    x3 = jax.random.normal(k3, (2, 8, 28, 28), dtype=jnp.float32)
    out3 = jax.block_until_ready(simam(x3))
    ref3 = simam_reference(x3)
    assert jnp.allclose(out3, ref3, atol=2e-5, rtol=2e-5), "mismatch (2,8,28,28)"

    # 4) bf16 input exercises the low-precision tail (f32 statistics kept).
    x4 = jax.random.normal(k4, (2, 4, 16, 16), dtype=jnp.bfloat16)
    out4 = jax.block_until_ready(simam(x4))
    ref4 = simam_reference(x4.astype(jnp.float32))
    assert out4.dtype == jnp.bfloat16
    assert jnp.allclose(out4.astype(jnp.float32), ref4, atol=5e-2, rtol=5e-2), \
        "mismatch bf16 (2,4,16,16)"

    print("KERNEL_OK")
</pallas_src>

<mosaic_0001>
module attributes {stable_mosaic.version = 11 : i64} {
  func.func @_simam_kernel(%arg0: i32, %arg1: memref<8x256xf32, #tpu.memory_space<vmem>>, %arg2: memref<8x256xf32, #tpu.memory_space<vmem>>) attributes {dimension_semantics = [#tpu.dimension_semantics<parallel>], iteration_bounds = array<i64: 1>, scalar_prefetch = 0 : i64, scratch_operands = 0 : i64, tpu.core_type = #tpu.core_type<tc>, window_params = [{transform_indices = @transform_0, window_bounds = array<i64: 8, 256>}, {transform_indices = @transform_1, window_bounds = array<i64: 8, 256>}]} {
    %c0 = arith.constant 0 : index
    %c0_0 = arith.constant 0 : index
    %0 = vector.load %arg1[%c0, %c0_0] : memref<8x256xf32, #tpu.memory_space<vmem>>, vector<8x256xf32>
    %cst = arith.constant dense<0.000000e+00> : vector<8xf32>
    %1 = vector.multi_reduction <add>, %0, %cst [1] : vector<8x256xf32> to vector<8xf32>
    %2 = vector.shape_cast %1 : vector<8xf32> to vector<8x1xf32>
    %cst_1 = arith.constant 3.906250e-03 : f32
    %3 = vector.broadcast %cst_1 : f32 to vector<8x1xf32>
    %4 = arith.mulf %2, %3 : vector<8x1xf32>
    %5 = vector.broadcast %4 : vector<8x1xf32> to vector<8x256xf32>
    %6 = arith.subf %0, %5 : vector<8x256xf32>
    %7 = arith.mulf %6, %6 : vector<8x256xf32>
    %cst_2 = arith.constant dense<0.000000e+00> : vector<8xf32>
    %8 = vector.multi_reduction <add>, %7, %cst_2 [1] : vector<8x256xf32> to vector<8xf32>
    %9 = vector.shape_cast %8 : vector<8xf32> to vector<8x1xf32>
    %cst_3 = arith.constant 0.00392156886 : f32
    %10 = vector.broadcast %cst_3 : f32 to vector<8x1xf32>
    %11 = arith.mulf %9, %10 : vector<8x1xf32>
    %cst_4 = arith.constant 9.99999974E-5 : f32
    %12 = vector.broadcast %cst_4 : f32 to vector<8x1xf32>
    %13 = arith.addf %11, %12 : vector<8x1xf32>
    %cst_5 = arith.constant 4.000000e+00 : f32
    %14 = vector.broadcast %cst_5 : f32 to vector<8x1xf32>
    %15 = arith.mulf %14, %13 : vector<8x1xf32>
    %16 = tpu.reciprocal %15 : vector<8x1xf32> -> vector<8x1xf32>
    %17 = vector.broadcast %16 : vector<8x1xf32> to vector<8x256xf32>
    %18 = arith.mulf %7, %17 : vector<8x256xf32>
    %cst_6 = arith.constant 5.000000e-01 : f32
    %19 = vector.broadcast %cst_6 : f32 to vector<8x256xf32>
    %20 = arith.addf %18, %19 : vector<8x256xf32>
    %21 = arith.negf %20 : vector<8x256xf32>
    %22 = math.exp %21 : vector<8x256xf32>
    %cst_7 = arith.constant 1.000000e+00 : f32
    %23 = vector.broadcast %cst_7 : f32 to vector<8x256xf32>
    %24 = arith.addf %23, %22 : vector<8x256xf32>
    %25 = arith.divf %23, %24 : vector<8x256xf32>
    %26 = arith.mulf %0, %25 : vector<8x256xf32>
    %c0_8 = arith.constant 0 : index
    %c0_9 = arith.constant 0 : index
    %27 = vector.load %arg2[%c0_8, %c0_9] : memref<8x256xf32, #tpu.memory_space<vmem>>, vector<8x256xf32>
    tpu.vector_store %arg2[%c0_8, %c0_9], %26 {strides = array<i32>} : memref<8x256xf32, #tpu.memory_space<vmem>>, vector<8x256xf32>,
    return
  }
  func.func @transform_0(%arg0: i32) -> (i32, i32) {
    %c0_i32 = arith.constant 0 : i32
    %c0_i32_0 = arith.constant 0 : i32
    return %arg0, %c0_i32 : i32, i32
  }
  func.func @transform_1(%arg0: i32) -> (i32, i32) {
    %c0_i32 = arith.constant 0 : i32
    %c0_i32_0 = arith.constant 0 : i32
    return %arg0, %c0_i32 : i32, i32
  }
}

</mosaic_0001>

<bundles_post_ra>
// kernel: tpu_custom_call.1
= control target key start
LH: loop header
LB: loop body
LE: loop exit
PB: predicated region body
PF: predicated region fallthrough
CT: control target
= control target key end

     0   :  { %6 = vsyncpa [#allocation3], 0  ;;  %s171_s0 = inlined_call_operand.hbm [shape: f32[8,256], index: 0, kind: input, shape index: {}]   ;;  %s172_s1 = inlined_call_operand.hbm [shape: f32[8,256], index: 1, kind: output, shape index: {}]  }
   0x1   :  { %7 = vsyncpa [#allocation4], 0  ;;  %s135_s6 = smov [#allocation2]   ;;  %s87_s10 = scalar_lea.hbm %s171_s0, 256 }
   0x2   :  { %s14_s7 = sshll.u32 %s135_s6, 4  ;;  %p88_p0 = scmp.ne.s32.totalorder %s171_s0, %s87_s10  ;;  %s15_s7 = int_to_ptr.vmem [resolvable:$true] %s14_s7 }
   0x3   :  { %p91_p1 = scmp.lt.u32.totalorder %s87_s10, %s171_s0 }
   0x5   :  { %p93_p2 = pnand %p91_p1, %p88_p0 }
   0x7   :  { %96 = shalt.err (!%p93_p2)
}
   0x8   :  { %s97_s15 = scalar_lea.vmem %s15_s7, 256  ;;  %p102_p4 = scmp.lt.s32.totalorder %s15_s7, %s15_s7 }
   0x9   :  { %p98_p3 = scmp.ne.s32.totalorder %s15_s7, %s97_s15  ;;  %p103_p5 = scmp.lt.s32.totalorder %s97_s15, %s97_s15 }
   0xb   :  { %p104_p6 = por %p103_p5, %p102_p4 }
   0xd   :  { %p105_p7 = pnand %p104_p6, %p98_p3 }
   0xf   :  { %108 = shalt.err (!%p105_p7)
}
  0x10   :  { %17 = dma.hbm_to_vmem [thread:$0]  %s171_s0, 256, %s15_s7, [#allocation3]  }
  0x11   :  { %131 = dma.done.wait [#allocation3], 256  }
  0x12   :  { %132 = vsyncadd [#allocation3], 4294967040  ;;  %v21_v0 = vld [vmem:[#allocation2] sm:$0xff]  ;;  %v22_v1 = vld [vmem:[#allocation2 + $0x8] sm:$0xff]  ;;  %s136_s0 = smov [#allocation5]  }
  0x13   :  { %v23_v2 = vadd.f32 %v22_v1, %v21_v0  ;;  %s64_s18 = sshll.u32 %s136_s0, 4  ;;  %s65_s18 = int_to_ptr.vmem [resolvable:$true] %s64_s18 }
  0x14   :  { %s109_s19 = scalar_lea.vmem %s65_s18, 256  ;;  %p114_p9 = scmp.lt.s32.totalorder %s65_s18, %s65_s18 }
  0x15   :  { %24 = vadd.xlane.f32.xlu0 %v23_v2  ;;  %p110_p8 = scmp.ne.s32.totalorder %s65_s18, %s109_s19  ;;  %p115_p10 = scmp.lt.s32.totalorder %s109_s19, %s109_s19 }
  0x17   :  { %p116_p11 = por %p115_p10, %p114_p9 }
  0x19   :  { %p117_p12 = pnand %p116_p11, %p110_p8 }
  0xa2   :  { %v25_v3 = vpop.xlane.xlu0 %24 }
  0xa3   :  { %v26_v4 = vmul.f32 0.00390625, %v25_v3 }
  0xa5   :  { %v27_v5 = vsub.f32 %v21_v0, %v26_v4  ;;  %v28_v6 = vsub.f32 %v22_v1, %v26_v4 }
  0xa7   :  { %v29_v7 = vmul.f32 %v27_v5, %v27_v5  ;;  %v30_v8 = vmul.f32 %v28_v6, %v28_v6 }
  0xa9   :  { %v31_v9 = vadd.f32 %v30_v8, %v29_v7 }
  0xab   :  { %32 = vadd.xlane.f32.xlu0 %v31_v9 }
 0x138   :  { %v33_v10 = vpop.xlane.xlu0 %32 }
 0x139   :  { %v34_v11 = vmul.f32 0.003921569, %v33_v10 }
 0x13b   :  { %v35_v12 = vadd.f32 0.0001, %v34_v11 }
 0x13d   :  { %v36_v13 = vmul.f32 4.0, %v35_v12 }
 0x13f   :  { %77 = vrcp.f32 %v36_v13 }
 0x149   :  { %v78_v14 = vpop.eup %77 }
 0x14a   :  { %v38_v15 = vmul.f32 %v78_v14, %v29_v7  ;;  %v39_v16 = vmul.f32 %v78_v14, %v30_v8 }
 0x14c   :  { %v40_v17 = vadd.f32 0.5, %v38_v15  ;;  %v41_v18 = vadd.f32 0.5, %v39_v16 }
 0x14e   :  { %v73_v19 = vmul.f32 -1.442695, %v40_v17  ;;  %v74_v20 = vmul.f32 -1.442695, %v41_v18 }
 0x150   :  { %79 = vpow2.f32 %v73_v19 }
 0x151   :  { %81 = vpow2.f32 %v74_v20 }
 0x15a   :  { %v80_v21 = vpop.eup %79 }
 0x15b   :  { %v82_v22 = vpop.eup %81  ;;  %v48_v23 = vadd.f32 1.0, %v80_v21 }
 0x15c   :  { %v49_v24 = vadd.f32 1.0, %v82_v22 }
 0x15d   :  { %83 = vrcp.f32 %v48_v23 }
 0x15e   :  { %85 = vrcp.f32 %v49_v24 }
 0x167   :  { %v84_v25 = vpop.eup %83 }
 0x168   :  { %v86_v26 = vpop.eup %85  ;;  %v54_v27 = vmul.f32 %v84_v25, %v21_v0 }
 0x169   :  { %v55_v28 = vmul.f32 %v86_v26, %v22_v1 }
 0x16a   :  { %56 = vst [vmem:[#allocation5] sm:$0xff] %v54_v27 }
 0x16b   :  { %57 = vst [vmem:[#allocation5 + $0x8] sm:$0xff] %v55_v28 }
 0x16c   :  { %120 = shalt.err (!%p117_p12)
}
 0x16d   :  { %s121_s22 = scalar_lea.hbm %s172_s1, 256 }
 0x16e   :  { %p122_p13 = scmp.ne.s32.totalorder %s172_s1, %s121_s22  ;;  %p125_p0 = scmp.lt.u32.totalorder %s121_s22, %s172_s1 }
 0x170   :  { %p127_p1 = pnand %p125_p0, %p122_p13 }
 0x172   :  { %130 = shalt.err (!%p127_p1)
}
 0x173   :  { %67 = dma.vmem_to_hbm [thread:$0]  %s65_s18, 256, %s172_s1, [#allocation4]  }
 0x174   :  { %133 = dma.done.wait [#allocation4], 256  }
 0x175   :  { %134 = vsyncadd [#allocation4], 4294967040 }
 0x176   :  { %71 = vsyncpa [#allocation3], 1 }
 0x177   :  { %72 = vsyncpa [#allocation4], 1 }

</bundles_post_ra>
